<compile_context>
chip_gen: v7x
topology: tpu7x:2x2x1
jax: 0.10.0
libtpu: 0.0.40
codegen_flags: <defaults>
</compile_context>

<pallas_src>
import functools

import jax
import jax.numpy as jnp
from jax.experimental import pallas as pl
from jax.experimental.pallas import tpu as pltpu

NUM_CLASSES = 19      # hard-coded n_clusters in the reference module
LOSS_WEIGHT = 0.01    # default loss_weight
KMEANS_ITERS = 20     # TODO(synk): sklearn uses max_iter=300 + tol early-stop and
                      # empty-cluster relocation; a fixed Lloyd iteration count is
                      # used here (no clean static-grid Pallas equivalent).


# ----------------------------------------------------------------------------
# Fused kernel: all Lloyd iterations + final cosine loss in one pallas_call.
#   grid = (n_iter,) ; "arbitrary" (sequential centroid carry).
#   Inputs : proto (C, A) f32 resident, feat (n_pad, A) f32 resident
#            (both have constant index_maps -> DMA'd from HBM exactly once).
#   Output : loss (1, 1) f32, written only at the last grid step.
#   Scratch: carried centroids (C, A) f32.
# ----------------------------------------------------------------------------
def _pcl_kernel(proto_ref, feat_ref, loss_ref, cent_ref, *,
                n_valid, tn, loss_weight):
    it = pl.program_id(0)            # Lloyd iteration
    n_iter = pl.num_programs(0)

    C, A = cent_ref.shape            # (19, feat_dim)
    n_pad = feat_ref.shape[0]
    n_tiles = n_pad // tn            # static

    # ---- seed centroids from Proto once, at the first grid step
    @pl.when(it == 0)
    def _():
        cent_ref[...] = proto_ref[...].astype(jnp.float32)

    cent = cent_ref[...]                                         # (C, A) f32
    c_sq = jnp.sum(cent * cent, axis=1, keepdims=True)           # (C, 1) hoisted

    def tile_body(t, carry):
        sums, counts = carry
        start = pl.multiple_of(t * tn, tn)
        x = feat_ref[pl.ds(start, tn), :]                        # (tn, A) f32

        # squared distance up to a per-point constant: ||c||^2 - 2 c.x
        # lane-dense (C, tn) layout; dot_general contracts the A axis of both
        # operands so no transpose is materialized.  f32 throughout.
        dots = jax.lax.dot_general(
            cent, x, (((1,), (1,)), ((), ())),
            preferred_element_type=jnp.float32)                  # (C, tn)
        dists = c_sq - 2.0 * dots

        # first-index argmin (sklearn tie-breaking); both reductions are over
        # the tiny C=19 sublane axis.
        min_d = jnp.min(dists, axis=0, keepdims=True)            # (1, tn)
        cidx = jax.lax.broadcasted_iota(jnp.int32, (C, tn), 0)
        assign = jnp.min(jnp.where(dists <= min_d, cidx, C),
                         axis=0, keepdims=True)                  # (1, tn)

        # mask zero-padded rows (feat is row-padded to a tile multiple in the
        # wrapper) so they never pollute sums/counts.
        pt = jax.lax.broadcasted_iota(jnp.int32, (1, tn), 1) + start
        one_hot = jnp.logical_and(cidx == assign,
                                  pt < n_valid).astype(jnp.float32)   # (C, tn)

        # scatter-sum: plain untransposed MXU matmul; counts via a lane reduce.
        sums = sums + jnp.dot(one_hot, x,
                              preferred_element_type=jnp.float32)     # (C, A)
        counts = counts + jnp.sum(one_hot, axis=1, keepdims=True)     # (C, 1)
        return sums, counts

    sums, counts = jax.lax.fori_loop(
        0, n_tiles, tile_body,
        (jnp.zeros((C, A), jnp.float32), jnp.zeros((C, 1), jnp.float32)))

    mean = sums / jnp.maximum(counts, 1.0)
    # keep the previous centroid for empty clusters
    new_cent = jnp.where(counts > 0.0, mean, cent)
    cent_ref[...] = new_cent

    # ---- final grid step: cosine loss between flattened Proto and centroids
    @pl.when(it == n_iter - 1)
    def _():
        p = proto_ref[...].astype(jnp.float32)
        q = new_cent
        dot = jnp.sum(p * q)
        n1 = jnp.sqrt(jnp.sum(p * p))
        n2 = jnp.sqrt(jnp.sum(q * q))
        # same divide-by-zero behaviour as the PyTorch reference when a norm is 0
        loss_ref[...] = jnp.broadcast_to(
            jnp.abs(1.0 - dot / (n1 * n2)) * loss_weight, (1, 1))


# ----------------------------------------------------------------------------
# PCLoss forward
# ----------------------------------------------------------------------------
@functools.partial(jax.jit, static_argnames=("tn", "n_iter"))
def pc_loss(proto, feat, labels, *, tn=512, n_iter=KMEANS_ITERS):
    """proto: (C, A) f32, feat: (N, A) float, labels: (N,) int32 (unused)."""
    del labels  # unused in the reference forward as well
    n, a = feat.shape
    c = proto.shape[0]

    n_tiles = -(-n // tn)          # cdiv
    n_pad = n_tiles * tn

    # Single pass over feat in HBM: cast to f32 (no-op if already f32) and
    # zero-pad rows to a tile multiple.  Everything afterwards stays resident
    # in VMEM for all Lloyd iterations.
    feat_f32 = jnp.pad(feat.astype(jnp.float32), ((0, n_pad - n), (0, 0)))

    # VMEM budget: resident feat (worst case double-buffered by the pipeline)
    # + proto + centroid scratch + headroom, clamped to ~90% of physical VMEM.
    need = 2 * n_pad * a * 4 + 4 * c * a * 4 + (4 << 20)
    try:
        vmem_cap = int(pltpu.get_tpu_info().vmem_capacity_bytes)
    except Exception:
        vmem_cap = 64 << 20        # v7x floor (v5e/v6e have 128 MiB)
    vmem_limit = int(min(max(32 << 20, need), int(0.9 * vmem_cap)))
    # TODO(synk): if feat does not fit the VMEM budget (need > vmem_limit), fall
    # back to a streaming grid over feat tiles (and a larger tn) instead of the
    # VMEM-resident plan used here.

    kernel = functools.partial(_pcl_kernel, n_valid=n, tn=tn,
                               loss_weight=LOSS_WEIGHT)

    loss = pl.pallas_call(
        kernel,
        out_shape=jax.ShapeDtypeStruct((1, 1), jnp.float32),
        grid=(n_iter,),
        in_specs=[
            pl.BlockSpec((c, a), lambda it: (0, 0)),       # Proto (resident)
            pl.BlockSpec((n_pad, a), lambda it: (0, 0)),   # feat (resident, 1 DMA)
        ],
        out_specs=pl.BlockSpec((1, 1), lambda it: (0, 0)),
        scratch_shapes=[
            pltpu.VMEM((c, a), jnp.float32),               # carried centroids
        ],
        compiler_params=pltpu.CompilerParams(
            dimension_semantics=("arbitrary",),
            vmem_limit_bytes=vmem_limit),
    )(proto.astype(jnp.float32), feat_f32)
    return loss[0, 0]


if __name__ == "__main__":
    key = jax.random.PRNGKey(0)
    k1, k2, k3 = jax.random.split(key, 3)

    C = NUM_CLASSES   # n_clusters is hard-coded to 19 in the module
    A = 32            # feat_dim
    N = 256           # number of (non-ignored) pixels B*H*W

    proto = jax.random.normal(k1, (C, A), dtype=jnp.float32)
    # feat drawn near the prototypes so the clustering is well-posed
    assign = jax.random.randint(k2, (N,), 0, C)
    feat = proto[assign] + 0.1 * jax.random.normal(k3, (N, A), dtype=jnp.float32)
    labels = assign.astype(jnp.int32)   # unused by forward, kept for parity

    out = pc_loss(proto, feat, labels)
    jax.block_until_ready(out)
    print("KERNEL_OK")
</pallas_src>

<mosaic_0001>
module attributes {stable_mosaic.version = 11 : i64} {
  func.func @_pcl_kernel(%arg0: i32, %arg1: memref<19x32xf32, #tpu.memory_space<vmem>>, %arg2: memref<512x32xf32, #tpu.memory_space<vmem>>, %arg3: memref<1x1xf32, #tpu.memory_space<vmem>>, %arg4: memref<19x32xf32, #tpu.memory_space<vmem>>) attributes {dimension_semantics = [#tpu.dimension_semantics<arbitrary>], iteration_bounds = array<i64: 20>, scalar_prefetch = 0 : i64, scratch_operands = 1 : i64, tpu.core_type = #tpu.core_type<tc>, window_params = [{pipeline_mode = #tpu.pipeline_mode<synchronous>, transform_indices = @transform_0, window_bounds = array<i64: 19, 32>}, {pipeline_mode = #tpu.pipeline_mode<synchronous>, transform_indices = @transform_1, window_bounds = array<i64: 512, 32>}, {pipeline_mode = #tpu.pipeline_mode<synchronous>, transform_indices = @transform_2, window_bounds = array<i64: 1, 1>}]} {
    %c0_i32 = arith.constant 0 : i32
    %0 = arith.cmpi eq, %arg0, %c0_i32 : i32
    %1 = arith.extui %0 : i1 to i32
    %c0_i32_0 = arith.constant 0 : i32
    %2 = arith.cmpi ne, %1, %c0_i32_0 : i32
    scf.if %2 {
      %c0_18 = arith.constant 0 : index
      %c0_19 = arith.constant 0 : index
      %56 = vector.load %arg1[%c0_18, %c0_19] : memref<19x32xf32, #tpu.memory_space<vmem>>, vector<19x32xf32>
      %c0_20 = arith.constant 0 : index
      %c0_21 = arith.constant 0 : index
      %57 = vector.load %arg4[%c0_20, %c0_21] : memref<19x32xf32, #tpu.memory_space<vmem>>, vector<19x32xf32>
      tpu.vector_store %arg4[%c0_20, %c0_21], %56 {strides = array<i32>} : memref<19x32xf32, #tpu.memory_space<vmem>>, vector<19x32xf32>,
    } else {
    }
    %c0 = arith.constant 0 : index
    %c0_1 = arith.constant 0 : index
    %3 = vector.load %arg4[%c0, %c0_1] : memref<19x32xf32, #tpu.memory_space<vmem>>, vector<19x32xf32>
    %4 = arith.mulf %3, %3 : vector<19x32xf32>
    %cst = arith.constant dense<0.000000e+00> : vector<19xf32>
    %5 = vector.multi_reduction <add>, %4, %cst [1] : vector<19x32xf32> to vector<19xf32>
    %6 = vector.shape_cast %5 : vector<19xf32> to vector<19x1xf32>
    %cst_2 = arith.constant 0.000000e+00 : f32
    %7 = vector.broadcast %cst_2 : f32 to vector<19x32xf32>
    %cst_3 = arith.constant 0.000000e+00 : f32
    %8 = vector.broadcast %cst_3 : f32 to vector<19x1xf32>
    %c0_i32_4 = arith.constant 0 : i32
    %c512_i32 = arith.constant 512 : i32
    %9 = arith.muli %c0_i32_4, %c512_i32 : i32
    %10 = tpu.assume_multiple %9, 512 : i32
    %11 = arith.index_cast %10 : i32 to index
    %c0_5 = arith.constant 0 : index
    %12 = vector.load %arg2[%11, %c0_5] : memref<512x32xf32, #tpu.memory_space<vmem>>, vector<512x32xf32>
    %cst_6 = arith.constant dense<0.000000e+00> : vector<19x512xf32>
    %13 = tpu.matmul %3, %12, %cst_6 {dimension_numbers = #tpu.dot_dimension_numbers<[1], [1], [0], [0], [0, 0, 1, 0], [], []>} : vector<19x32xf32>, vector<512x32xf32>, vector<19x512xf32> -> vector<19x512xf32>
    %cst_7 = arith.constant 2.000000e+00 : f32
    %14 = vector.broadcast %cst_7 : f32 to vector<19x512xf32>
    %15 = arith.mulf %14, %13 : vector<19x512xf32>
    %16 = vector.broadcast %6 : vector<19x1xf32> to vector<19x512xf32>
    %17 = arith.subf %16, %15 : vector<19x512xf32>
    %cst_8 = arith.constant dense<0x7F800000> : vector<512xf32>
    %18 = vector.multi_reduction <minimumf>, %17, %cst_8 [0] : vector<19x512xf32> to vector<512xf32>
    %19 = vector.shape_cast %18 : vector<512xf32> to vector<1x512xf32>
    %20 = tpu.iota {dimensions = array<i32: 0>} : vector<19x512xi32>
    %21 = vector.broadcast %19 : vector<1x512xf32> to vector<19x512xf32>
    %22 = arith.cmpf ole, %17, %21 : vector<19x512xf32>
    %c19_i32 = arith.constant 19 : i32
    %23 = vector.broadcast %c19_i32 : i32 to vector<19x512xi32>
    %24 = arith.select %22, %20, %23 : vector<19x512xi1>, vector<19x512xi32>
    %cst_9 = arith.constant dense<2147483647> : vector<512xi32>
    %25 = vector.multi_reduction <minsi>, %24, %cst_9 [0] : vector<19x512xi32> to vector<512xi32>
    %26 = vector.shape_cast %25 : vector<512xi32> to vector<1x512xi32>
    %27 = tpu.iota {dimensions = array<i32: 1>} : vector<1x512xi32>
    %28 = vector.broadcast %10 : i32 to vector<1x512xi32>
    %29 = arith.addi %27, %28 : vector<1x512xi32>
    %30 = vector.broadcast %26 : vector<1x512xi32> to vector<19x512xi32>
    %31 = arith.cmpi eq, %20, %30 : vector<19x512xi32>
    %c256_i32 = arith.constant 256 : i32
    %32 = vector.broadcast %c256_i32 : i32 to vector<1x512xi32>
    %33 = arith.cmpi slt, %29, %32 : vector<1x512xi32>
    %34 = vector.broadcast %33 : vector<1x512xi1> to vector<19x512xi1>
    %35 = arith.andi %31, %34 : vector<19x512xi1>
    %36 = arith.extui %35 : vector<19x512xi1> to vector<19x512xi32>
    %37 = arith.sitofp %36 : vector<19x512xi32> to vector<19x512xf32>
    %cst_10 = arith.constant dense<0.000000e+00> : vector<19x32xf32>
    %38 = tpu.matmul %37, %12, %cst_10 {dimension_numbers = #tpu.dot_dimension_numbers<[1], [0], [0], [1], [0, 0, 1, 1], [], []>} : vector<19x512xf32>, vector<512x32xf32>, vector<19x32xf32> -> vector<19x32xf32>
    %39 = arith.addf %7, %38 : vector<19x32xf32>
    %cst_11 = arith.constant dense<0.000000e+00> : vector<19xf32>
    %40 = vector.multi_reduction <add>, %37, %cst_11 [1] : vector<19x512xf32> to vector<19xf32>
    %41 = vector.shape_cast %40 : vector<19xf32> to vector<19x1xf32>
    %42 = arith.addf %8, %41 : vector<19x1xf32>
    %c1_i32 = arith.constant 1 : i32
    %cst_12 = arith.constant 1.000000e+00 : f32
    %43 = vector.broadcast %cst_12 : f32 to vector<19x1xf32>
    %44 = arith.maximumf %42, %43 : vector<19x1xf32>
    %45 = vector.broadcast %44 : vector<19x1xf32> to vector<19x32xf32>
    %46 = arith.divf %39, %45 : vector<19x32xf32>
    %cst_13 = arith.constant 0.000000e+00 : f32
    %47 = vector.broadcast %cst_13 : f32 to vector<19x1xf32>
    %48 = arith.cmpf ogt, %42, %47 : vector<19x1xf32>
    %49 = vector.shape_cast %48 : vector<19x1xi1> to vector<19x1xi1>
    %50 = vector.broadcast %49 : vector<19x1xi1> to vector<19x32xi1>
    %51 = arith.select %50, %46, %3 : vector<19x32xi1>, vector<19x32xf32>
    %c0_14 = arith.constant 0 : index
    %c0_15 = arith.constant 0 : index
    %52 = vector.load %arg4[%c0_14, %c0_15] : memref<19x32xf32, #tpu.memory_space<vmem>>, vector<19x32xf32>
    tpu.vector_store %arg4[%c0_14, %c0_15], %51 {strides = array<i32>} : memref<19x32xf32, #tpu.memory_space<vmem>>, vector<19x32xf32>,
    %c19_i32_16 = arith.constant 19 : i32
    %53 = arith.cmpi eq, %arg0, %c19_i32_16 : i32
    %54 = arith.extui %53 : i1 to i32
    %c0_i32_17 = arith.constant 0 : i32
    %55 = arith.cmpi ne, %54, %c0_i32_17 : i32
    scf.if %55 {
      %c0_18 = arith.constant 0 : index
      %c0_19 = arith.constant 0 : index
      %56 = vector.load %arg1[%c0_18, %c0_19] : memref<19x32xf32, #tpu.memory_space<vmem>>, vector<19x32xf32>
      %57 = arith.mulf %56, %51 : vector<19x32xf32>
      %58 = vector.shape_cast %57 : vector<19x32xf32> to vector<1x19x32xf32>
      %cst_20 = arith.constant dense<0.000000e+00> : vector<1xf32>
      %59 = vector.multi_reduction <add>, %58, %cst_20 [1, 2] : vector<1x19x32xf32> to vector<1xf32>
      %60 = vector.shape_cast %59 : vector<1xf32> to vector<1x1x1xf32>
      %61 = vector.extract %60[0, 0, 0] : f32 from vector<1x1x1xf32>
      %62 = arith.mulf %56, %56 : vector<19x32xf32>
      %63 = vector.shape_cast %62 : vector<19x32xf32> to vector<1x19x32xf32>
      %cst_21 = arith.constant dense<0.000000e+00> : vector<1xf32>
      %64 = vector.multi_reduction <add>, %63, %cst_21 [1, 2] : vector<1x19x32xf32> to vector<1xf32>
      %65 = vector.shape_cast %64 : vector<1xf32> to vector<1x1x1xf32>
      %66 = vector.extract %65[0, 0, 0] : f32 from vector<1x1x1xf32>
      %67 = math.sqrt %66 : f32
      %68 = arith.mulf %51, %51 : vector<19x32xf32>
      %69 = vector.shape_cast %68 : vector<19x32xf32> to vector<1x19x32xf32>
      %cst_22 = arith.constant dense<0.000000e+00> : vector<1xf32>
      %70 = vector.multi_reduction <add>, %69, %cst_22 [1, 2] : vector<1x19x32xf32> to vector<1xf32>
      %71 = vector.shape_cast %70 : vector<1xf32> to vector<1x1x1xf32>
      %72 = vector.extract %71[0, 0, 0] : f32 from vector<1x1x1xf32>
      %73 = math.sqrt %72 : f32
      %74 = arith.mulf %67, %73 : f32
      %75 = arith.divf %61, %74 : f32
      %cst_23 = arith.constant 1.000000e+00 : f32
      %76 = arith.subf %cst_23, %75 : f32
      %77 = math.absf %76 : f32
      %cst_24 = arith.constant 0.00999999977 : f32
      %78 = arith.mulf %77, %cst_24 : f32
      %79 = vector.broadcast %78 : f32 to vector<1x1xf32>
      %c0_25 = arith.constant 0 : index
      %c0_26 = arith.constant 0 : index
      %80 = vector.load %arg3[%c0_25, %c0_26] : memref<1x1xf32, #tpu.memory_space<vmem>>, vector<1x1xf32>
      tpu.vector_store %arg3[%c0_25, %c0_26], %79 {strides = array<i32>} : memref<1x1xf32, #tpu.memory_space<vmem>>, vector<1x1xf32>,
    } else {
    }
    return
  }
  func.func @transform_0(%arg0: i32) -> (i32, i32) {
    %c0_i32 = arith.constant 0 : i32
    %c0_i32_0 = arith.constant 0 : i32
    %c0_i32_1 = arith.constant 0 : i32
    return %c0_i32, %c0_i32_0 : i32, i32
  }
  func.func @transform_1(%arg0: i32) -> (i32, i32) {
    %c0_i32 = arith.constant 0 : i32
    %c0_i32_0 = arith.constant 0 : i32
    %c0_i32_1 = arith.constant 0 : i32
    return %c0_i32, %c0_i32_0 : i32, i32
  }
  func.func @transform_2(%arg0: i32) -> (i32, i32) {
    %c0_i32 = arith.constant 0 : i32
    %c0_i32_0 = arith.constant 0 : i32
    %c0_i32_1 = arith.constant 0 : i32
    return %c0_i32, %c0_i32_0 : i32, i32
  }
}

</mosaic_0001>

<bundles_post_ra>
// kernel: pc_loss.1
= control target key start
LH: loop header
LB: loop body
LE: loop exit
PB: predicated region body
PF: predicated region fallthrough
CT: control target
= control target key end

     0   :  { %7 = vsyncpa [#allocation4], 0  ;;  %s1618_s9 = smov 0   ;;  %s2107_s0 = inlined_call_operand.vmem [shape: f32[19,32], index: 0, kind: input, shape index: {}]   ;;  %s2108_s1 = inlined_call_operand.vmem [shape: f32[512,32], index: 1, kind: input, shape index: {}]   ;;  %s2109_s2 = inlined_call_operand.hbm [shape: f32[1,1], index: 2, kind: output, shape index: {}]  }
   0x1 LB: > { %s1624_s10 = sadd.s32 4294967295, %s1598_s9   ;;  %p1114_p0 = scmp.ge.s32.totalorder %s1598_s9, 1  ;;  %s1598_s9 = sphi %s1618_s9, %s13_s9  }
   0x2   : > { %p98_p1 = scmp.lt.s32.totalorder %s1598_s9, 21 }
   0x4   : > { %p99_p2 = pnand %p1114_p0, %p98_p1 }
   0x5   : > { %p1115_p3 = scmp.ne.s32.totalorder (!%p99_p2), %s1624_s10, 0 }
   0x6   : > { %102 = sbr.rel (%p99_p2) target bundleno = 1019 (0x3fb), region = 28 }
   0xd   : > { %113 = sbr.rel (%p1115_p3) target bundleno = 20 (0x14), region = 32  ;;  %v114_v0 = vld [vmem:[%s2107_s0] sm:$0xff] (!%p1115_p3)  ;;  %vm117_vm0 = vcmask (!%p1115_p3), 261120   ;;  %v115_v1 = vld [vmem:[%s2107_s0 + $0x8] sm:$0xff] (!%p1115_p3)  ;;  %v116_v2 = vld [vmem:[%s2107_s0 + $0x10] sm:$0x7] (!%p1115_p3) }
   0xe   : > { %vm120_vm1 = vcmask (!%p1115_p3), 256000   ;;  %118 = vst.msk [vmem:[#allocation2] sm:$0xff] (!%p1115_p3), %vm117_vm0, %v114_v0  ;;  %119 = vst.msk [vmem:[#allocation2 + $0x8] sm:$0xff] (!%p1115_p3), %vm117_vm0, %v115_v1 }
   0xf   : > { %121 = vst.msk [vmem:[#allocation2 + $0x10] sm:$0x7] (!%p1115_p3), %vm120_vm1, %v116_v2 }
  0x14 PF: > { %vm128_vm2 = vcmask 261120   ;;  %v155_v3 = vld [vmem:[%s2108_s1 + $0x80] sm:$0xff]  ;;  %v156_v4 = vld [vmem:[%s2108_s1 + $0x88] sm:$0xff]  ;;  %v157_v9 = vld [vmem:[%s2108_s1 + $0x90] sm:$0xff]  ;;  %vm135_vm4 = vcmask 256000   ;;  %v1600_v7 = vmov 0.0  }
  0x15   : > { %v139_v5 = vld [vmem:[%s2108_s1] sm:$0xff]  ;;  %v1647_v6 = vpack.c.bf16 %v156_v4, %v155_v3  ;;  %vm1651_vm3 = vmpackc.low %vm128_vm2, %vm128_vm2  ;;  %v140_v8 = vld [vmem:[%s2108_s1 + $0x8] sm:$0xff]  ;;  %vm595_vm5 = vcmask 1042432   ;;  %p1198_p4 = scmp.ne.s32.totalorder %s1624_s10, 19 }
  0x16   : > { %v1661_v10 = vpack.c.bf16 %v140_v8, %v139_v5  ;;  %v158_v11 = vld [vmem:[%s2108_s1 + $0x98] sm:$0xff]  ;;  %v141_v13 = vld [vmem:[%s2108_s1 + $0x10] sm:$0xff]  ;;  %v159_v15 = vld [vmem:[%s2108_s1 + $0xa0] sm:$0xff] }
  0x17   : > { %1363 = vmatprep.subr.msk.bf16.mxu0 %vm1651_vm3, %v1647_v6  ;;  %v1669_v12 = vpack.c.bf16 %v158_v11, %v157_v9  ;;  %v142_v14 = vld [vmem:[%s2108_s1 + $0x18] sm:$0xff]  ;;  %v160_v16 = vld [vmem:[%s2108_s1 + $0xa8] sm:$0xff]  ;;  %v143_v19 = vld [vmem:[%s2108_s1 + $0x20] sm:$0xff] }
  0x18   : > { %1366 = vmatpush3.bf16.xpose.msk.msra.mxu0 %vm1651_vm3, %v1661_v10  ;;  %v1689_v17 = vpack.c.bf16 %v142_v14, %v141_v13  ;;  %v1691_v18 = vpack.c.bf16 %v160_v16, %v159_v15  ;;  %v144_v20 = vld [vmem:[%s2108_s1 + $0x28] sm:$0xff]  ;;  %v1699_v21 = vld [vmem:[#allocation2] sm:$0xff]  ;;  %v1703_v23 = vld [vmem:[#allocation2 + $0x10] sm:$0x7] }
  0x19   : > { %1369 = vmatprep.subr.msk.bf16.mxu0 %vm1651_vm3, %v1669_v12  ;;  %v1701_v22 = vld [vmem:[#allocation2 + $0x8] sm:$0xff]  ;;  %1235 = vmatprep.mubr.msk.f32.mxu0 %vm128_vm2, %v1699_v21  ;;  %v125_v24 = vmul.f32 %v1699_v21, %v1699_v21  ;;  %v127_v26 = vmul.f32 %v1703_v23, %v1703_v23  ;;  %v187_v27 = vld [vmem:[%s2108_s1 + $0x180] sm:$0xff]  ;;  %v189_v32 = vld [vmem:[%s2108_s1 + $0x190] sm:$0xff]  ;;  %v1753_v40 = vpack.c.bf16 %v144_v20, %v143_v19 }
  0x1a   : > { %v126_v25 = vmul.f32 %v1701_v22, %v1701_v22  ;;  %v188_v28 = vld [vmem:[%s2108_s1 + $0x188] sm:$0xff]  ;;  %v171_v29 = vld [vmem:[%s2108_s1 + $0x100] sm:$0xff]  ;;  %v190_v33 = vld [vmem:[%s2108_s1 + $0x198] sm:$0xff]  ;;  %1273 = vmatprep.mubr.msk.f32.mxu1 %vm128_vm2, %v1699_v21 }
  0x1b   : > { %v1728_v30 = vpack.c.bf16 %v188_v28, %v187_v27  ;;  %v172_v31 = vld [vmem:[%s2108_s1 + $0x108] sm:$0xff]  ;;  %v161_v34 = vld [vmem:[%s2108_s1 + $0xb0] sm:$0xff]  ;;  %v162_v35 = vld [vmem:[%s2108_s1 + $0xb8] sm:$0xff]  ;;  %v129_v36 = vsel %vm128_vm2, %v125_v24, 0.0  ;;  %v136_v37 = vsel %vm135_vm4, %v127_v26, 0.0  ;;  %v1751_v39 = vpack.c.bf16 %v190_v33, %v189_v32 }
  0x1c   : > { %v1749_v38 = vpack.c.bf16 %v172_v31, %v171_v29  ;;  %130 = vadd.xlane.f32.xlu0 %v129_v36  ;;  %137 = vadd.xlane.f32.xlu1 %v136_v37  ;;  %v132_v41 = vsel %vm128_vm2, %v126_v25, 0.0  ;;  %v1759_v42 = vpack.c.bf16 %v162_v35, %v161_v34  ;;  %v173_v43 = vld [vmem:[%s2108_s1 + $0x110] sm:$0xff]  ;;  %v174_v44 = vld [vmem:[%s2108_s1 + $0x118] sm:$0xff]  ;;  %v191_v45 = vld [vmem:[%s2108_s1 + $0x1a0] sm:$0xff] }
  0x1d   : > { %1411 = vmatprep.subr.msk.bf16.mxu1 %vm1651_vm3, %v1728_v30  ;;  %v192_v46 = vld [vmem:[%s2108_s1 + $0x1a8] sm:$0xff]  ;;  %v145_v47 = vld [vmem:[%s2108_s1 + $0x30] sm:$0xff]  ;;  %v146_v48 = vld [vmem:[%s2108_s1 + $0x38] sm:$0xff]  ;;  %v1791_v49 = vpack.c.bf16 %v174_v44, %v173_v43 }
  0x1e   : > { %1414 = vmatpush3.bf16.xpose.msk.msra.mxu1 %vm1651_vm3, %v1749_v38  ;;  %v163_v50 = vld [vmem:[%s2108_s1 + $0xc0] sm:$0xff]  ;;  %v164_v51 = vld [vmem:[%s2108_s1 + $0xc8] sm:$0xff]  ;;  %v1799_v52 = vpack.c.bf16 %v192_v46, %v191_v45  ;;  %v1801_v53 = vpack.c.bf16 %v146_v48, %v145_v47  ;;  %v193_v57 = vld [vmem:[%s2108_s1 + $0x1b0] sm:$0xff] }
  0x1f   : > { %1417 = vmatprep.subr.msk.bf16.mxu1 %vm1651_vm3, %v1751_v39  ;;  %v1803_v54 = vpack.c.bf16 %v164_v51, %v163_v50  ;;  %v175_v55 = vld [vmem:[%s2108_s1 + $0x120] sm:$0xff]  ;;  %v176_v56 = vld [vmem:[%s2108_s1 + $0x128] sm:$0xff]  ;;  %v194_v58 = vld [vmem:[%s2108_s1 + $0x1b8] sm:$0xff] }
  0x20   : > { %1372 = vmatpush3.bf16.xpose.msk.msra.mxu0 %vm1651_vm3, %v1689_v17  ;;  %133 = vadd.xlane.f32.xlu0 %v132_v41  ;;  %v147_v59 = vld [vmem:[%s2108_s1 + $0x40] sm:$0xff]  ;;  %v148_v60 = vld [vmem:[%s2108_s1 + $0x48] sm:$0xff]  ;;  %v1835_v61 = vpack.c.bf16 %v176_v56, %v175_v55  ;;  %v165_v62 = vld [vmem:[%s2108_s1 + $0xd0] sm:$0xff]  ;;  %v1843_v0 = vpack.c.bf16 %v194_v58, %v193_v57 }
  0x21   : > { %1375 = vmatprep.subr.msk.bf16.mxu0 %vm1651_vm3, %v1691_v18  ;;  %v166_v63 = vld [vmem:[%s2108_s1 + $0xd8] sm:$0xff]  ;;  %v1388_v1 = vpack.c.bf16 %v148_v60, %v147_v59  ;;  %v177_v3 = vld [vmem:[%s2108_s1 + $0x130] sm:$0xff]  ;;  %v195_v5 = vld [vmem:[%s2108_s1 + $0x1c0] sm:$0xff] }
  0x22   : > { %v1391_v2 = vpack.c.bf16 %v166_v63, %v165_v62  ;;  %v178_v4 = vld [vmem:[%s2108_s1 + $0x138] sm:$0xff]  ;;  %v196_v8 = vld [vmem:[%s2108_s1 + $0x1c8] sm:$0xff]  ;;  %v149_v9 = vld [vmem:[%s2108_s1 + $0x50] sm:$0xff] }
  0x23   : > { %v150_v11 = vld [vmem:[%s2108_s1 + $0x58] sm:$0xff]  ;;  %v1873_v13 = vpack.c.bf16 %v178_v4, %v177_v3  ;;  %v167_v14 = vld [vmem:[%s2108_s1 + $0xe0] sm:$0xff]  ;;  %v168_v15 = vld [vmem:[%s2108_s1 + $0xe8] sm:$0xff]  ;;  %v1881_v16 = vpack.c.bf16 %v196_v8, %v195_v5 }
  0x24   : > { %v1394_v19 = vpack.c.bf16 %v150_v11, %v149_v9  ;;  %v1397_v20 = vpack.c.bf16 %v168_v15, %v167_v14  ;;  %v179_v24 = vld [vmem:[%s2108_s1 + $0x140] sm:$0xff]  ;;  %v180_v25 = vld [vmem:[%s2108_s1 + $0x148] sm:$0xff]  ;;  %v197_v26 = vld [vmem:[%s2108_s1 + $0x1d0] sm:$0xff] }
  0x25   : > { %v198_v27 = vld [vmem:[%s2108_s1 + $0x1d8] sm:$0xff]  ;;  %v151_v28 = vld [vmem:[%s2108_s1 + $0x60] sm:$0xff]  ;;  %v152_v29 = vld [vmem:[%s2108_s1 + $0x68] sm:$0xff]  ;;  %v1911_v31 = vpack.c.bf16 %v180_v25, %v179_v24 }
  0x26   : > { %1420 = vmatpush3.bf16.xpose.msk.msra.mxu1 %vm1651_vm3, %v1791_v49  ;;  %v169_v32 = vld [vmem:[%s2108_s1 + $0xf0] sm:$0xff]  ;;  %v170_v33 = vld [vmem:[%s2108_s1 + $0xf8] sm:$0xff]  ;;  %v1919_v34 = vpack.c.bf16 %v198_v27, %v197_v26  ;;  %v1400_v35 = vpack.c.bf16 %v152_v29, %v151_v28 }
  0x27   : > { %1423 = vmatprep.subr.msk.bf16.mxu1 %vm1651_vm3, %v1799_v52  ;;  %v1403_v36 = vpack.c.bf16 %v170_v33, %v169_v32  ;;  %v181_v37 = vld [vmem:[%s2108_s1 + $0x150] sm:$0xff]  ;;  %v182_v41 = vld [vmem:[%s2108_s1 + $0x158] sm:$0xff] }
  0x28   : > { %1378 = vmatpush3.bf16.xpose.msk.msra.mxu0 %vm1651_vm3, %v1753_v40  ;;  %v153_v43 = vld [vmem:[%s2108_s1 + $0x70] sm:$0xff]  ;;  %v154_v44 = vld [vmem:[%s2108_s1 + $0x78] sm:$0xff]  ;;  %v1442_v45 = vpack.c.bf16 %v182_v41, %v181_v37 }
  0x29   : > { %1381 = vmatprep.subr.msk.bf16.mxu0 %vm1651_vm3, %v1759_v42  ;;  %v1406_v46 = vpack.c.bf16 %v154_v44, %v153_v43  ;;  %v202_v47 = vld [vmem:[%s2108_s1 + $0x1f8] sm:$0xff]  ;;  %v185_v50 = vld [vmem:[%s2108_s1 + $0x170] sm:$0xff] }
  0x2a   : > { %v186_v51 = vld [vmem:[%s2108_s1 + $0x178] sm:$0xff] }
  0x2e   : > { %1426 = vmatpush3.bf16.xpose.msk.msra.mxu1 %vm1651_vm3, %v1835_v61 }
  0x2f   : > { %1429 = vmatprep.subr.msk.bf16.mxu1 %vm1651_vm3, %v1843_v0 }
  0x30   : > { %1384 = vmatpush3.bf16.xpose.msk.msra.mxu0 %vm1651_vm3, %v1801_v53 }
  0x31   : > { %1387 = vmatprep.subr.msk.bf16.mxu0 %vm1651_vm3, %v1803_v54 }
  0x36   : > { %1432 = vmatpush3.bf16.xpose.msk.msra.mxu1 %vm1651_vm3, %v1873_v13 }
  0x37   : > { %1435 = vmatprep.subr.msk.bf16.mxu1 %vm1651_vm3, %v1881_v16 }
  0x38   : > { %1390 = vmatpush3.bf16.xpose.msk.msra.mxu0 %vm1651_vm3, %v1388_v1 }
  0x39   : > { %1393 = vmatprep.subr.msk.bf16.mxu0 %vm1651_vm3, %v1391_v2 }
  0x3e   : > { %1438 = vmatpush3.bf16.xpose.msk.msra.mxu1 %vm1651_vm3, %v1911_v31 }
  0x3f   : > { %1441 = vmatprep.subr.msk.bf16.mxu1 %vm1651_vm3, %v1919_v34 }
  0x40   : > { %1396 = vmatpush3.bf16.xpose.msk.msra.mxu0 %vm1651_vm3, %v1394_v19 }
  0x41   : > { %1399 = vmatprep.subr.msk.bf16.mxu0 %vm1651_vm3, %v1397_v20 }
  0x46   : > { %1444 = vmatpush3.bf16.xpose.msk.msra.mxu1 %vm1651_vm3, %v1442_v45 }
  0x48   : > { %1402 = vmatpush3.bf16.xpose.msk.msra.mxu0 %vm1651_vm3, %v1400_v35 }
  0x49   : > { %1405 = vmatprep.subr.msk.bf16.mxu0 %vm1651_vm3, %v1403_v36 }
  0x50   : > { %1408 = vmatpush3.bf16.xpose.msk.msra.mxu0 %vm1651_vm3, %v1406_v46 }
  0x51   : > { %1458 = vmatprep.subr.bf16.mxu0 %v1647_v6  ;;  %v199_v6 = vld [vmem:[%s2108_s1 + $0x1e0] sm:$0xff] }
  0x57   : > { %1236 = vmatmul.mubr.msk.f32.vlgmr.msra.gmra.mrb[0].mxu0 %vm128_vm2, %v1699_v21 }
  0x58   : > { %1237 = vmatprep.mubr.msk.f32.mxu0 %vm128_vm2, %v1701_v22  ;;  %1460 = vmatpush3.bf16.msra.mxu0 %v1661_v10  ;;  %v200_v10 = vld [vmem:[%s2108_s1 + $0x1e8] sm:$0xff] }
  0x59   : > { %1462 = vmatprep.subr.bf16.mxu0 %v1669_v12  ;;  %v1445_v12 = vpack.c.bf16 %v200_v10, %v199_v6 }
  0x5b   : > { %1238 = vmatmul.mubr.msk.f32.gmra.mrb[2].mxu0 %vm128_vm2, %v1701_v22  ;;  %1447 = vmatprep.subr.msk.bf16.mxu1 %vm1651_vm3, %v1445_v12 }
  0x5c   : > { %1239 = vmatprep.mubr.msk.f32.mxu0 %vm128_vm2, %v1703_v23  ;;  %1464 = vmatpush3.bf16.msra.mxu0 %v1689_v17  ;;  %v183_v17 = vld [vmem:[%s2108_s1 + $0x160] sm:$0xff] }
  0x5d   : > { %1466 = vmatprep.subr.bf16.mxu0 %v1691_v18  ;;  %v184_v18 = vld [vmem:[%s2108_s1 + $0x168] sm:$0xff] }
  0x5f   : > { %1240 = vmatmul.mubr.msk.f32.gmra.mrb[4].mxu0 %vm128_vm2, %v1703_v23 }
  0x60   : > { %1468 = vmatpush3.bf16.msra.mxu0 %v1753_v40  ;;  %v1448_v40 = vpack.c.bf16 %v184_v18, %v183_v17 }
  0x61   : > { %1470 = vmatprep.subr.bf16.mxu0 %v1759_v42  ;;  %v201_v42 = vld [vmem:[%s2108_s1 + $0x1f0] sm:$0xff] }
  0x62   : > { %1450 = vmatpush3.bf16.xpose.msk.msra.mxu1 %vm1651_vm3, %v1448_v40  ;;  %v1451_v48 = vpack.c.bf16 %v202_v47, %v201_v42 }
  0x64   : > { %1472 = vmatpush3.bf16.msra.mxu0 %v1801_v53  ;;  %v1454_v53 = vpack.c.bf16 %v186_v51, %v185_v50  ;;  %1453 = vmatprep.subr.msk.bf16.mxu1 %vm1651_vm3, %v1451_v48 }
  0x65   : > { %1474 = vmatprep.subr.bf16.mxu0 %v1803_v54 }
  0x68   : > { %1476 = vmatpush3.bf16.msra.mxu0 %v1388_v1 }
  0x69   : > { %1478 = vmatprep.subr.bf16.mxu0 %v1391_v2 }
  0x6a   : > { %1456 = vmatpush3.bf16.xpose.msk.msra.mxu1 %vm1651_vm3, %v1454_v53 }
  0x6b   : > { %1490 = vmatprep.subr.bf16.mxu1 %v1728_v30 }
  0x6c   : > { %1480 = vmatpush3.bf16.msra.mxu0 %v1394_v19 }
  0x6d   : > { %1482 = vmatprep.subr.bf16.mxu0 %v1397_v20  ;;  %v631_v20 = vlaneseq }
  0x6f   : > { %v632_v28 = vshrl.u32 %v631_v20, 7 }
  0x70   : > { %1484 = vmatpush3.bf16.msra.mxu0 %v1400_v35 }
  0x71   : > { %1486 = vmatprep.subr.bf16.mxu0 %v1403_v36  ;;  %1274 = vmatmul.mubr.msk.f32.vlgmr.msra.gmra.mrb[0].mxu1 %vm128_vm2, %v1699_v21  ;;  %v2029_v35 = vadd.s32 16, %v632_v28 }
  0x72   : > { %1492 = vmatpush3.bf16.msra.mxu1 %v1749_v38  ;;  %1275 = vmatprep.mubr.msk.f32.mxu1 %vm128_vm2, %v1701_v22 }
  0x73   : > { %1494 = vmatprep.subr.bf16.mxu1 %v1751_v39 }
  0x74   : > { %1488 = vmatpush3.bf16.msra.mxu0 %v1406_v46 }
  0x75   : > { %1276 = vmatmul.mubr.msk.f32.gmra.mrb[2].mxu1 %vm128_vm2, %v1701_v22 }
  0x76   : > { %1496 = vmatpush3.bf16.msra.mxu1 %v1791_v49  ;;  %1277 = vmatprep.mubr.msk.f32.mxu1 %vm128_vm2, %v1703_v23 }
  0x77   : > { %1498 = vmatprep.subr.bf16.mxu1 %v1799_v52 }
  0x79   : > { %1278 = vmatmul.mubr.msk.f32.gmra.mrb[4].mxu1 %vm128_vm2, %v1703_v23 }
  0x7a   : > { %1500 = vmatpush3.bf16.msra.mxu1 %v1835_v61  ;;  %929 = vmatprep.mubr.f32.mxu1 %v1600_v7 }
  0x7b   : > { %1502 = vmatprep.subr.bf16.mxu1 %v1843_v0 }
  0x7e   : > { %1504 = vmatpush3.bf16.msra.mxu1 %v1873_v13 }
  0x7f   : > { %1506 = vmatprep.subr.bf16.mxu1 %v1881_v16 }
  0x82   : > { %1508 = vmatpush3.bf16.msra.mxu1 %v1911_v31 }
  0x83   : > { %1510 = vmatprep.subr.bf16.mxu1 %v1919_v34  ;;  %v2027_v34 = vadd.s32 8, %v632_v28 }
  0x86   : > { %1512 = vmatpush3.bf16.msra.mxu1 %v1442_v45 }
  0x87   : > { %1514 = vmatprep.subr.bf16.mxu1 %v1445_v12 }
  0x8a   : > { %1516 = vmatpush3.bf16.msra.mxu1 %v1448_v40 }
  0x8b   : > { %1518 = vmatprep.subr.bf16.mxu1 %v1451_v48 }
  0x8e   : > { %1520 = vmatpush3.bf16.msra.mxu1 %v1454_v53 }
  0x91   : > { %930 = vmatmul.mubr.f32.vlgmr.msra.gmra.mrb[6].mxu1 %v1600_v7 }
  0x92   : > { %934 = vmatprep.mubr.f32.mxu1 %v1600_v7 }
  0x95   : > { %935 = vmatmul.mubr.f32.gmra.mrb[8].mxu1 %v1600_v7 }
  0x96   : > { %939 = vmatprep.mubr.f32.mxu1 %v1600_v7 }
  0x99   : > { %940 = vmatmul.mubr.f32.gmra.mrb[10].mxu1 %v1600_v7 }
  0xa9   : > { %v131_v30 = vpop.xlane.xlu0 %130  ;;  %v138_v0 = vpop.xlane.xlu1 %137 }
  0xad   : > { %v134_v55 = vpop.xlane.xlu0 %133 }
 0x12a   : > { %v470_v38 = vpop.f32.mrb[0].mxu0 }
 0x12b   : > { %v472_v39 = vpop.f32.mrb[1].mxu0  ;;  %v570_v49 = vmul.f32 2.0, %v470_v38 }
 0x12c   : > { %v571_v52 = vmul.f32 2.0, %v472_v39 }
 0x12d   : > { %v582_v59 = vsub.f32 %v131_v30, %v570_v49 }
 0x12e   : > { %v476_v54 = vpop.f32.mrb[2].mxu0  ;;  %v583_v61 = vsub.f32 %v131_v30, %v571_v52 }
 0x12f   : > { %v574_v56 = vmul.f32 2.0, %v476_v54  ;;  %v478_v57 = vpop.f32.mrb[3].mxu0 }
 0x130   : > { %v575_v58 = vmul.f32 2.0, %v478_v57 }
 0x131   : > { %v586_v60 = vsub.f32 %v134_v55, %v574_v56  ;;  %v1601_v56 = vmov 1.0  }
 0x132   : > { %v587_v62 = vsub.f32 %v134_v55, %v575_v58  ;;  %v482_v63 = vpop.f32.mrb[4].mxu0 }
 0x133   : > { %v594_v1 = vmin.f32 %v582_v59, %v586_v60  ;;  %v578_v2 = vmul.f32 2.0, %v482_v63  ;;  %v484_v3 = vpop.f32.mrb[5].mxu0 }
 0x134   : > { %v604_v4 = vmin.f32 %v583_v61, %v587_v62  ;;  %v579_v5 = vmul.f32 2.0, %v484_v3 }
 0x135   : > { %v590_v8 = vsub.f32 %v138_v0, %v578_v2 }
 0x136   : > { %v591_v9 = vsub.f32 %v138_v0, %v579_v5 }
 0x137   : > { %v596_v11 = vsel %vm595_vm5, %v590_v8, inf }
 0x138   : > { %v597_v13 = vmin.f32 %v594_v1, %v596_v11  ;;  %v605_v14 = vsel %vm595_vm5, %v591_v9, inf }
 0x139   : > { %v606_v15 = vmin.f32 %v604_v4, %v605_v14 }
 0x13a   : > { %v598_v16 = vrot.slane %v597_v13, 4 }
 0x13b   : > { %v607_v19 = vrot.slane %v606_v15, 4 }
 0x13c   : > { %v599_v24 = vmin.f32 %v597_v13, %v598_v16 }
 0x13d   : > { %v608_v25 = vmin.f32 %v606_v15, %v607_v19 }
 0x13e   : > { %v600_v26 = vrot.slane %v599_v24, 2 }
 0x13f   : > { %v609_v27 = vrot.slane %v608_v25, 2 }
 0x140   : > { %v601_v29 = vmin.f32 %v599_v24, %v600_v26 }
 0x141   : > { %v610_v31 = vmin.f32 %v608_v25, %v609_v27 }
 0x142   : > { %v602_v32 = vrot.slane %v601_v29, 1 }
 0x143   : > { %v611_v33 = vrot.slane %v610_v31, 1 }
 0x144   : > { %v603_v36 = vmin.f32 %v601_v29, %v602_v32  ;;  %v553_v4 = vpop.f32.mrb[0].mxu1 }
 0x145   : > { %v612_v37 = vmin.f32 %v610_v31, %v611_v33  ;;  %v555_v5 = vpop.f32.mrb[1].mxu1 }
 0x146   : > { %vm635_vm6 = vcmp.le.f32.partialorder %v582_v59, %v603_v36  ;;  %vm639_vm7 = vcmp.le.f32.partialorder %v586_v60, %v603_v36  ;;  %vm643_vm8 = vcmp.le.f32.partialorder %v590_v8, %v603_v36 }
 0x147   : > { %vm636_vm9 = vcmp.le.f32.partialorder %v583_v61, %v612_v37  ;;  %vm640_vm10 = vcmp.le.f32.partialorder %v587_v62, %v612_v37  ;;  %vm644_vm11 = vcmp.le.f32.partialorder %v591_v9, %v612_v37  ;;  %v647_v41 = vsel %vm635_vm6, %v632_v28, 19 }
 0x148   : > { %v648_v43 = vsel %vm636_vm9, %v632_v28, 19  ;;  %v651_v44 = vsel %vm639_vm7, %v2027_v34, 19  ;;  %v652_v45 = vsel %vm640_vm10, %v2027_v34, 19  ;;  %v655_v46 = vsel %vm643_vm8, %v2029_v35, 19  ;;  %v559_v8 = vpop.f32.mrb[2].mxu1 }
 0x149   : > { %v656_v6 = vsel %vm644_vm11, %v2029_v35, 19  ;;  %vm659_vm12 = vcmp.lt.s32.totalorder %v647_v41, %v651_v44  ;;  %v661_v10 = vsel %vm595_vm5, %v655_v46, 2147483647  ;;  %vm673_vm13 = vcmp.lt.s32.totalorder %v648_v43, %v652_v45  ;;  %v561_v9 = vpop.f32.mrb[3].mxu1 }
 0x14a   : > { %v660_v12 = vsel %vm659_vm12, %v647_v41, %v651_v44  ;;  %v674_v17 = vsel %vm673_vm13, %v648_v43, %v652_v45  ;;  %v675_v18 = vsel %vm595_vm5, %v656_v6, 2147483647 }
 0x14b   : > { %vm662_vm14 = vcmp.lt.s32.totalorder %v660_v12, %v661_v10  ;;  %vm676_vm15 = vcmp.lt.s32.totalorder %v674_v17, %v675_v18 }
 0x14c   : > { %v663_v40 = vsel %vm662_vm14, %v660_v12, %v661_v10  ;;  %v677_v42 = vsel %vm676_vm15, %v674_v17, %v675_v18  ;;  %v565_v11 = vpop.f32.mrb[4].mxu1 }
 0x14d   : > { %v664_v47 = vrot.slane %v663_v40, 4  ;;  %v678_v48 = vrot.slane %v677_v42, 4  ;;  %v567_v13 = vpop.f32.mrb[5].mxu1 }
 0x14f   : > { %vm665_vm0 = vcmp.lt.s32.totalorder %v663_v40, %v664_v47  ;;  %vm679_vm1 = vcmp.lt.s32.totalorder %v677_v42, %v678_v48 }
 0x150   : > { %v666_v50 = vsel %vm665_vm0, %v663_v40, %v664_v47  ;;  %v680_v51 = vsel %vm679_vm1, %v677_v42, %v678_v48 }
 0x151   : > { %v667_v53 = vrot.slane %v666_v50, 2  ;;  %v681_v30 = vrot.slane %v680_v51, 2 }
 0x153   : > { %vm668_vm3 = vcmp.lt.s32.totalorder %v666_v50, %v667_v53  ;;  %vm682_vm6 = vcmp.lt.s32.totalorder %v680_v51, %v681_v30 }
 0x154   : > { %v669_v38 = vsel %vm668_vm3, %v666_v50, %v667_v53  ;;  %v683_v39 = vsel %vm682_vm6, %v680_v51, %v681_v30  ;;  %v997_v30 = vld [vmem:[%s2107_s0 + $0x10] sm:$0x7] (!%p1198_p4)  ;;  %vm1076_vm6 = vcmask (!%p1198_p4), 0  }
 0x155   : > { %v670_v49 = vrot.slane %v669_v38, 1  ;;  %v684_v52 = vrot.slane %v683_v39, 1 }
 0x157   : > { %vm685_vm7 = vcmp.lt.s32.totalorder %v683_v39, %v684_v52  ;;  %vm671_vm8 = vcmp.lt.s32.totalorder %v669_v38, %v670_v49 }
 0x158   : > { %v686_v54 = vsel %vm685_vm7, %v683_v39, %v684_v52  ;;  %v672_v55 = vsel %vm671_vm8, %v669_v38, %v670_v49 }
 0x159   : > { %vm726_vm9 = vcmp.eq.s32.totalorder %v632_v28, %v686_v54  ;;  %vm725_vm10 = vcmp.eq.s32.totalorder %v632_v28, %v672_v55  ;;  %vm730_vm11 = vcmp.eq.s32.totalorder %v2027_v34, %v686_v54  ;;  %vm729_vm12 = vcmp.eq.s32.totalorder %v2027_v34, %v672_v55 }
 0x15a   : > { %1192 = vmatprep.mubr.msk.f32.mxu0 %vm726_vm9, %v1601_v56  ;;  %v1188_v57 = vsel %vm729_vm12, 1.0, %v1600_v7  ;;  %v1189_v58 = vsel %vm730_vm11, 1.0, %v1600_v7  ;;  %v1186_v59 = vsel %vm725_vm10, 1.0, %v1600_v7  ;;  %v1187_v60 = vsel %vm726_vm9, 1.0, %v1600_v7 }
 0x15b   : > { %1193 = vmatmul.mubr.msk.f32.vlgmr.msra.gmra.mrb[6].mxu0 %vm725_vm10, %v1601_v56  ;;  %v950_v61 = vadd.f32 %v1189_v58, %v1188_v57  ;;  %v945_v62 = vadd.f32 %v1187_v60, %v1186_v59  ;;  %vm734_vm13 = vcmp.eq.s32.totalorder %v2029_v35, %v686_v54  ;;  %vm733_vm14 = vcmp.eq.s32.totalorder %v2029_v35, %v672_v55 }
 0x15c   : > { %1194 = vmatprep.mubr.msk.f32.mxu0 %vm730_vm11, %v1601_v56  ;;  %v1190_v63 = vsel %vm733_vm14, 1.0, %v1600_v7  ;;  %v1191_v0 = vsel %vm734_vm13, 1.0, %v1600_v7  ;;  %v1017_v57 = vmul.f32 (!%p1198_p4), %v997_v30, %v997_v30 }
 0x15d   : > { %953 = vadd.xlane.f32.xlu0 %v950_v61  ;;  %948 = vadd.xlane.f32.xlu1 %v945_v62  ;;  %v955_v1 = vsel %vm595_vm5, %v1190_v63, 0.0  ;;  %v956_v2 = vsel %vm595_vm5, %v1191_v0, 0.0 }
 0x15e   : > { %v957_v3 = vadd.f32 %v956_v2, %v955_v1  ;;  %v1021_v4 = vsel (!%p1198_p4), %vm135_vm4, %v1017_v57, 0.0 }
 0x15f   : > { %1195 = vmatmul.mubr.msk.f32.gmra.mrb[8].mxu0 %vm729_vm12, %v1601_v56 }
 0x160   : > { %1196 = vmatprep.mubr.msk.f32.mxu0 %vm734_vm13, %v1601_v56 }
 0x161   : > { %962 = vadd.xlane.f32.xlu1 %v957_v3 }
 0x163   : > { %1197 = vmatmul.mubr.msk.f32.gmra.mrb[10].mxu0 %vm733_vm14, %v1601_v56 }
 0x164   : > { %v1352_v7 = vpop.f32.mrb[6].mxu1 }
 0x165   : > { %v1353_v14 = vpop.f32.mrb[7].mxu1 }
 0x166   : > { %v1354_v15 = vadd.f32 %v1353_v14, %v1352_v7 }
 0x168   : > { %v1355_v16 = vpop.f32.mrb[8].mxu1 }
 0x169   : > { %v1356_v19 = vpop.f32.mrb[9].mxu1 }
 0x16a   : > { %v1357_v20 = vadd.f32 %v1356_v19, %v1355_v16 }
 0x16c   : > { %v1358_v24 = vpop.f32.mrb[10].mxu1 }
 0x16d   : > { %v1359_v25 = vpop.f32.mrb[11].mxu1 }
 0x16e   : > { %v1360_v26 = vadd.f32 %v1359_v25, %v1358_v24 }
 0x1ea   : > { %v949_v27 = vpop.xlane.xlu1 %948  ;;  %v954_v29 = vpop.xlane.xlu0 %953 }
 0x1eb   : > { %v967_v28 = vmax.f32 %v949_v27, 1.0  ;;  %v968_v31 = vmax.f32 %v954_v29, 1.0  ;;  %vm976_vm5 = vcmp.gt.f32.partialorder %v949_v27, 0.0  ;;  %vm977_vm15 = vcmp.gt.f32.partialorder %v954_v29, 0.0 }
 0x1ed   : > { %1550 = vrcp.f32 %v967_v28 }
 0x1ee   : > { %v963_v32 = vpop.xlane.xlu1 %962  ;;  %1552 = vrcp.f32 %v968_v31 }
 0x1ef   : > { %v969_v33 = vmax.f32 %v963_v32, 1.0  ;;  %vm978_vm0 = vcmp.gt.f32.partialorder %v963_v32, 0.0 }
 0x1f1   : > { %1554 = vrcp.f32 %v969_v33 }
 0x1f7   : > { %v1551_v43 = vpop.eup %1550 }
 0x1f8   : > { %v1553_v17 = vpop.eup %1552 }
 0x1fb   : > { %v1555_v50 = vpop.eup %1554 }
 0x22e   : > { %v1311_v34 = vpop.f32.mrb[6].mxu0 }
 0x22f   : > { %v1312_v35 = vpop.f32.mrb[7].mxu0 }
 0x230   : > { %v1313_v36 = vadd.f32 %v1312_v35, %v1311_v34 }
 0x232   : > { %v932_v37 = vadd.f32 %v1354_v15, %v1313_v36  ;;  %v1314_v41 = vpop.f32.mrb[8].mxu0 }
 0x233   : > { %v1315_v44 = vpop.f32.mrb[9].mxu0 }
 0x234   : > { %v971_v45 = vmul.f32 %v1551_v43, %v932_v37  ;;  %v1316_v46 = vadd.f32 %v1315_v44, %v1314_v41 }
 0x236   : > { %v985_v6 = vsel %vm976_vm5, %v971_v45, %v1699_v21  ;;  %v937_v10 = vadd.f32 %v1357_v20, %v1316_v46  ;;  %v1317_v12 = vpop.f32.mrb[10].mxu0  ;;  %v995_v21 = vld [vmem:[%s2107_s0] sm:$0xff] (!%p1198_p4) }
 0x237   : > { %988 = vst.msk [vmem:[#allocation2] sm:$0xff] %vm128_vm2, %v985_v6  ;;  %v1318_v18 = vpop.f32.mrb[11].mxu0  ;;  %v1041_v38 = vmul.f32 (!%p1198_p4), %v985_v6, %v985_v6  ;;  %v998_v49 = vmul.f32 (!%p1198_p4), %v995_v21, %v985_v6  ;;  %v1015_v55 = vmul.f32 (!%p1198_p4), %v995_v21, %v995_v21 }
 0x238   : > { %v973_v40 = vmul.f32 %v1553_v17, %v937_v10  ;;  %v1319_v42 = vadd.f32 %v1318_v18, %v1317_v12 }
 0x239   : > { %994 = sbr.rel (%p1198_p4) target bundleno = 994 (0x3e2), region = 36  ;;  %v1044_v58 = vsel (!%p1198_p4), %vm128_vm2, %v1041_v38, 0.0  ;;  %v1001_v60 = vsel (!%p1198_p4), %vm128_vm2, %v998_v49, 0.0  ;;  %v1018_v63 = vsel (!%p1198_p4), %vm128_vm2, %v1015_v55, 0.0 }
 0x23a   : > { %v986_v47 = vsel %vm977_vm15, %v973_v40, %v1701_v22  ;;  %v942_v48 = vadd.f32 %v1360_v26, %v1319_v42  ;;  %v996_v22 = vld [vmem:[%s2107_s0 + $0x8] sm:$0xff] (!%p1198_p4) }
 0x23b   : > { %989 = vst.msk [vmem:[#allocation2 + $0x8] sm:$0xff] %vm128_vm2, %v986_v47  ;;  %v1042_v39 = vmul.f32 (!%p1198_p4), %v986_v47, %v986_v47  ;;  %v999_v52 = vmul.f32 (!%p1198_p4), %v996_v22, %v986_v47  ;;  %v1016_v56 = vmul.f32 (!%p1198_p4), %v996_v22, %v996_v22 }
 0x23c   : > { %v975_v51 = vmul.f32 %v1555_v50, %v942_v48 }
 0x23d   : > { %v1045_v59 = vsel (!%p1198_p4), %vm128_vm2, %v1042_v39, 0.0  ;;  %v1002_v61 = vsel (!%p1198_p4), %vm128_vm2, %v999_v52, 0.0  ;;  %v1019_v1 = vsel (!%p1198_p4), %vm128_vm2, %v1016_v56, 0.0 }
 0x23e   : > { %v987_v53 = vsel %vm978_vm0, %v975_v51, %v1703_v23  ;;  %v1003_v0 = vadd.f32 (!%p1198_p4), %v1002_v61, %v1001_v60  ;;  %v1046_v2 = vadd.f32 (!%p1198_p4), %v1045_v59, %v1044_v58  ;;  %v1020_v3 = vadd.f32 (!%p1198_p4), %v1019_v1, %v1018_v63 }
 0x23f   : > { %990 = vst.msk [vmem:[#allocation2 + $0x10] sm:$0x7] %vm135_vm4, %v987_v53  ;;  %v1043_v23 = vmul.f32 (!%p1198_p4), %v987_v53, %v987_v53  ;;  %v1000_v54 = vmul.f32 (!%p1198_p4), %v997_v30, %v987_v53 }
 0x240   : > { %v1022_v11 = vadd.f32 %v1021_v4, %v1020_v3 }
 0x241   : > { %v1004_v62 = vsel %vm135_vm4, %v1000_v54, 0.0  ;;  %v1047_v5 = vsel %vm135_vm4, %v1043_v23, 0.0 }
 0x242   : > { %v1005_v8 = vadd.f32 %v1004_v62, %v1003_v0  ;;  %v1048_v9 = vadd.f32 %v1047_v5, %v1046_v2 }
 0x244   : > { %1006 = vadd.xlane.f32.xlu0 %v1005_v8  ;;  %1049 = vadd.xlane.f32.xlu1 %v1048_v9 }
 0x248   : > { %1023 = vadd.xlane.f32.xlu0 %v1022_v11 }
 0x2d1   : > { %v1007_v13 = vpop.xlane.xlu0 %1006  ;;  %v1050_v32 = vpop.xlane.xlu1 %1049 }
 0x2d2   : > { %v1008_v7 = vrot.slane %v1007_v13, 4  ;;  %v1051_v33 = vrot.slane %v1050_v32, 4 }
 0x2d4   : > { %v1009_v14 = vadd.f32 %v1008_v7, %v1007_v13  ;;  %v1052_v34 = vadd.f32 %v1051_v33, %v1050_v32 }
 0x2d5   : > { %v1024_v15 = vpop.xlane.xlu0 %1023 }
 0x2d6   : > { %v1010_v16 = vrot.slane %v1009_v14, 2  ;;  %v1025_v19 = vrot.slane %v1024_v15, 4  ;;  %v1053_v36 = vrot.slane %v1052_v34, 2 }
 0x2d8   : > { %v1026_v20 = vadd.f32 %v1025_v19, %v1024_v15  ;;  %v1011_v24 = vadd.f32 %v1010_v16, %v1009_v14  ;;  %v1054_v37 = vadd.f32 %v1053_v36, %v1052_v34 }
 0x2da   : > { %v1027_v25 = vrot.slane %v1026_v20, 2  ;;  %v1012_v26 = vrot.slane %v1011_v24, 1  ;;  %v1055_v43 = vrot.slane %v1054_v37, 1 }
 0x2dc   : > { %v1028_v27 = vadd.f32 %v1027_v25, %v1026_v20  ;;  %v1013_v28 = vadd.f32 %v1012_v26, %v1011_v24  ;;  %v1056_v10 = vadd.f32 %v1055_v43, %v1054_v37 }
 0x2de   : > { %1521 = vpush %v1013_v28  ;;  %v1029_v29 = vrot.slane %v1028_v27, 1 }
 0x2e0   : > { %v1030_v31 = vadd.f32 %v1029_v29, %v1028_v27 }
 0x2e2   : > { %1523 = vpush %v1030_v31 }
 0x30f   : > { %s2078_s21 = spop %1521 }
 0x313   : > { %s1524_s22 = spop %1523 }
 0x314   : > { %v1032_v35 = vstv %s1524_s22 }
 0x315   : > { %1556 = vrsqrt.f32 %v1032_v35  ;;  %vm1035_vm2 = vcmp.eq.f32.partialorder %v1032_v35, inf  ;;  %v1038_v45 = vand.u32 2147483648, %v1032_v35  ;;  %vm1037_vm4 = vcmp.eq.f32.partialorder %v1032_v35, 0.0 }
 0x31f   : > { %v1557_v41 = vpop.eup %1556 }
 0x320   : > { %v1034_v44 = vmul.f32 %v1557_v41, %v1032_v35 }
 0x322   : > { %v1036_v46 = vsel %vm1035_vm2, %v1032_v35, %v1034_v44 }
 0x323   : > { %v1039_v6 = vsel %vm1037_vm4, %v1038_v45, %v1036_v46 }
 0x324   : > { %1525 = vpush %v1039_v6 }
 0x325   : > { %1527 = vpush %v1056_v10 }
 0x355   : > { %s1526_s23 = spop %1525 }
 0x356   : > { %s1528_s24 = spop %1527 }
 0x357   : > { %v1058_v12 = vstv %s1528_s24 }
 0x358   : > { %1558 = vrsqrt.f32 %v1058_v12  ;;  %vm1061_vm1 = vcmp.eq.f32.partialorder %v1058_v12, inf  ;;  %v1064_v40 = vand.u32 2147483648, %v1058_v12  ;;  %vm1063_vm3 = vcmp.eq.f32.partialorder %v1058_v12, 0.0 }
 0x362   : > { %v1559_v17 = vpop.eup %1558 }
 0x363   : > { %v1060_v18 = vmul.f32 %v1559_v17, %v1058_v12 }
 0x365   : > { %v1062_v42 = vsel %vm1061_vm1, %v1058_v12, %v1060_v18 }
 0x366   : > { %v1065_v47 = vsel %vm1063_vm3, %v1064_v40, %v1062_v42 }
 0x367   : > { %1529 = vpush %v1065_v47 }
 0x398   : > { %s1530_s25 = spop %1529 }
 0x399   : > { %s1067_s26 = smul.f32 %s1530_s25, %s1526_s23 }
 0x39b   : > { %v1068_v48 = vstv %s1067_s26 }
 0x39c   : > { %1560 = vrcp.f32 %v1068_v48 }
 0x3a6   : > { %v1561_v50 = vpop.eup %1560 }
 0x3a7   : > { %1531 = vpush %v1561_v50 }
 0x3d8   : > { %s1532_s27 = spop %1531 }
 0x3d9   : > { %s1071_s28 = smul.f32 %s1532_s27, %s2078_s21 }
 0x3db   : > { %s1072_s29 = ssub.f32 1.0, %s1071_s28 }
 0x3dd   : > { %s1073_s30 = sand.u32 2147483647, %s1072_s29 }
 0x3de   : > { %s1074_s3 = smul.f32 0.01, %s1073_s30 }
 0x3e0   : > { %v1075_v51 = vstv %s1074_s3 }
 0x3e1   : > { %1077 = vst.msk [vmem:[#allocation3] sm:$0x1] %vm1076_vm6, %v1075_v51 }
 0x3e2 PF: > { %p1537_p5 = scmp.eq.s32.totalorder %s1624_s10, 19  ;;  %s1602_s4 = smov [#allocation3]  }
 0x3e3   : > { %s1085_s5 = sshll.u32 %s1602_s4, 4  ;;  %s1086_s5 = int_to_ptr.vmem [resolvable:$true] %s1085_s5 }
 0x3e4   : > { %s1562_s6 = scalar_lea.vmem %s1086_s5, 16  ;;  %s1568_s7 = scalar_lea.vmem %s1086_s5, 32 }
 0x3e5   : > { %p1563_p6 = scmp.ne.s32.totalorder %s1086_s5, %s1562_s6  ;;  %p1569_p9 = scmp.lt.s32.totalorder %s1086_s5, %s1086_s5 }
 0x3e6   : > { %p1570_p10 = scmp.lt.s32.totalorder %s1568_s7, %s1562_s6 }
 0x3e7   : > { %p1564_p7 = pnand %p1563_p6, %p1537_p5 }
 0x3e8   : > { %p1571_p11 = por %p1570_p10, %p1569_p9 }
 0x3e9   : > { %p1565_p8 = pneg %p1564_p7 }
 0x3eb   : > { %p1572_p12 = pnand %p1571_p11, %p1565_p8 }
 0x3ed   : > { %1575 = shalt.err (!%p1572_p12)
}
 0x3ee   : > { %s1576_s12 = scalar_lea.hbm %s2109_s2, 16 }
 0x3ef   : > { %p1577_p13 = scmp.ne.s32.totalorder %s2109_s2, %s1576_s12  ;;  %p1582_p2 = scmp.lt.u32.totalorder %s1576_s12, %s2109_s2 }
 0x3f1   : > { %p1578_p0 = pnand %p1577_p13, %p1537_p5 }
 0x3f3   : > { %p1579_p1 = pneg %p1578_p0 }
 0x3f5   : > { %p1584_p3 = pnand %p1582_p2, %p1579_p1 }
 0x3f7   : > { %1587 = shalt.err (!%p1584_p3)
}
 0x3f8   : > { %1534 = dma.vmem_to_hbm [thread:$0]  (%p1537_p5), %s1086_s5, 16, %s2109_s2, [#allocation4]  }
 0x3f9   : > { %1593 = dma.done.wait (%p1537_p5), [#allocation4], 16  }
 0x3fa   : > { %1595 = vsyncadd (%p1537_p5), [#allocation4], 4294967280 }
 0x3fb PF: > { %s13_s9 = sadd.s32 1, %s1598_s9  }
 0x3fc   : > { %p10_p4 = scmp.ge.s32.totalorder %s13_s9, 22  }
 0x3fe   :  { %12 = sbr.rel (!%p10_p4) target bundleno = 1 (0x1), region = 60 }
 0x405   :  { %1098 = vsyncpa [#allocation4], 1 }
 0x406   :  { %1100 = vsyncpa [#allocation4 + $0x1], 1 }

</bundles_post_ra>
